<compile_context>
chip_gen: v7x
topology: tpu7x:2x2x1
jax: 0.10.0
libtpu: 0.0.40
codegen_flags: <defaults>
</compile_context>

<pallas_src>
import jax
import jax.numpy as jnp
from jax.experimental import pallas as pl
from jax.experimental.pallas import tpu as pltpu

LN_EPS = 1e-12


# ------------------------------ small helpers -------------------------------

def _vmem_limit_bytes():
    """~75% of physical VMEM: ~96 MiB on v5e/v6e (128 MiB), ~48 MiB on v7x (64 MiB)."""
    try:
        cap = pltpu.get_tpu_info().vmem_capacity_bytes
    except Exception:
        cap = 64 * 1024 * 1024
    return int(cap * 3 // 4)


_VMEM_LIMIT = _vmem_limit_bytes()


def _pick_row_tile(m, target):
    """Largest multiple-of-8 divisor of m that is <= target (else m itself).
    Avoids any wrapper-side padding / slicing (no extra HBM sweeps)."""
    if m <= target:
        return m
    t = target - (target % 8)
    while t >= 8:
        if m % t == 0:
            return t
        t -= 8
    return m  # no divisor: single full block (semantically fine, VMEM permitting)


def _pick_lane_tile(n, target):
    """Largest multiple-of-128 divisor of n that is <= target (else n itself)."""
    if n <= target:
        return n
    t = target - (target % 128)
    while t >= 128:
        if n % t == 0:
            return t
        t -= 128
    return n


def _layernorm_f32(h, g, b, eps=LN_EPS):
    mu = jnp.mean(h, axis=-1, keepdims=True)
    var = jnp.mean(jnp.square(h - mu), axis=-1, keepdims=True)
    return (h - mu) * jax.lax.rsqrt(var + eps) * g + b


# ------------------------- fused attention block ---------------------------
# out = LN( W_o @ MHA(x, kv, kv) + b_o + x ) [+ x if outer_residual]

def _make_attention_kernel(num_heads, has_mask, outer_residual):
    def kernel(*refs):
        idx = 0
        xq_ref = refs[idx]; idx += 1          # (1, tq, H) query rows (+ residual)
        kv_ref = refs[idx]; idx += 1          # (1, L,  H) key/value source rows
        mask_ref = None
        if has_mask:
            mask_ref = refs[idx]; idx += 1    # (1, 1, L) or (1, tq, L) additive mask
        (wq_ref, bq_ref, wkv_ref, bkv_ref, wo_ref, bo_ref,
         g_ref, b_ref, o_ref, k_s, v_s, ctx_s) = refs[idx:]

        qi = pl.program_id(1)
        cdt = wq_ref.dtype                    # MXU compute dtype (bf16 / f32)
        H = xq_ref.shape[-1]
        hd = H // num_heads

        x = xq_ref[0]                         # (tq, H) activation dtype
        xf = x.astype(jnp.float32)            # f32 residual

        # K/V projection once per batch: staged in VMEM scratch at q-tile 0.
        # (qi axis is "arbitrary" => runs sequentially per batch on one core.)
        @pl.when(qi == 0)
        def _():
            kvx = kv_ref[0].astype(cdt)                             # (L, H)
            kvp = jnp.dot(kvx, wkv_ref[...],
                          preferred_element_type=jnp.float32)
            kvp = kvp + bkv_ref[...].astype(jnp.float32)            # (L, 2H)
            k_s[...] = kvp[:, :H].astype(k_s.dtype)
            v_s[...] = kvp[:, H:].astype(v_s.dtype)

        # Q projection for this query tile.  1/sqrt(hd) is pre-folded into
        # wq / bq at pack_params time (no runtime scale multiply).
        q = jnp.dot(x.astype(cdt), wq_ref[...],
                    preferred_element_type=jnp.float32)
        q = (q + bq_ref[...].astype(jnp.float32)).astype(cdt)       # (tq, H)

        k = k_s[...]                                                # (L, H) cdt
        v = v_s[...]                                                # (L, H) cdt
        m = mask_ref[0].astype(jnp.float32) if has_mask else None   # broadcasts

        # Per-head attention; each head's context is written straight to a
        # static lane slice of the VMEM ctx scratch (no concatenate relayout).
        # TODO(synk): fori_loop over a head-major scratch for num_heads >= 8.
        for h in range(num_heads):
            sl = slice(h * hd, (h + 1) * hd)
            s = jax.lax.dot_general(                                # q @ k^T
                q[:, sl], k[:, sl], (((1,), (1,)), ((), ())),
                preferred_element_type=jnp.float32)                 # (tq, L)
            if has_mask:
                s = s + m
            s = s - jnp.max(s, axis=-1, keepdims=True)
            p = jnp.exp(s)
            p = p * (1.0 / jnp.sum(p, axis=-1, keepdims=True))      # exact softmax
            ctx_s[:, sl] = jnp.dot(p.astype(cdt), v[:, sl],
                                   preferred_element_type=jnp.float32)

        # BertSelfOutput fused: output projection + residual + LayerNorm
        proj = jnp.dot(ctx_s[...].astype(cdt), wo_ref[...],
                       preferred_element_type=jnp.float32)
        proj = proj + bo_ref[...].astype(jnp.float32)
        y = _layernorm_f32(proj + xf,
                           g_ref[...].astype(jnp.float32),
                           b_ref[...].astype(jnp.float32))
        if outer_residual:                    # folded lone residual add
            y = y + xf
        o_ref[0] = y.astype(o_ref.dtype)

    return kernel


def attention_block(x, kv, p, mask, *, num_heads, outer_residual,
                    out_dtype, q_tile=256):
    """One fused BertAttention (+optional outer residual).  x:(B,S,H), kv:(B,L,H)."""
    B, S, H = x.shape
    L = kv.shape[1]
    assert H % num_heads == 0
    cdt = p["q_w"].dtype
    tq = _pick_row_tile(S, q_tile)
    nq = S // tq
    has_mask = mask is not None

    inputs = [x, kv]
    in_specs = [pl.BlockSpec((1, tq, H), lambda b, q_i: (b, q_i, 0)),
                pl.BlockSpec((1, L, H), lambda b, q_i: (b, 0, 0))]
    if has_mask:
        # Keep the mask un-broadcast ((B,1,L) HF-style) and broadcast on the
        # VPU inside the kernel; only pass per-query rows if genuinely per-query.
        m = mask.astype(jnp.float32).reshape(B, -1, mask.shape[-1])
        inputs.append(m)
        if m.shape[1] == 1:
            in_specs.append(pl.BlockSpec((1, 1, L), lambda b, q_i: (b, 0, 0)))
        else:
            assert m.shape[1] == S, "mask query dim must be 1 or S"
            in_specs.append(pl.BlockSpec((1, tq, L), lambda b, q_i: (b, q_i, 0)))

    weights = [p["q_w"], p["q_b"], p["kv_w"], p["kv_b"],
               p["o_w"], p["o_b"], p["ln_g"], p["ln_b"]]
    inputs += weights
    # Constant-index resident blocks: single buffer (no double-buffer VMEM cost).
    in_specs += [pl.BlockSpec(w.shape, lambda b, q_i: (0, 0),
                              pipeline_mode=pl.Buffered(1)) for w in weights]

    kernel = _make_attention_kernel(num_heads, has_mask, outer_residual)
    return pl.pallas_call(
        kernel,
        out_shape=jax.ShapeDtypeStruct((B, S, H), out_dtype),
        grid_spec=pltpu.PrefetchScalarGridSpec(
            num_scalar_prefetch=0,
            grid=(B, nq),
            in_specs=in_specs,
            out_specs=pl.BlockSpec((1, tq, H), lambda b, q_i: (b, q_i, 0)),
            scratch_shapes=[pltpu.VMEM((L, H), cdt),          # staged K
                            pltpu.VMEM((L, H), cdt),          # staged V
                            pltpu.VMEM((tq, H), jnp.float32)  # per-tile context
                            ],
        ),
        compiler_params=pltpu.CompilerParams(
            dimension_semantics=("parallel", "arbitrary"),
            vmem_limit_bytes=_VMEM_LIMIT),
    )(*inputs)


# ----------------------------- fused FFN block ------------------------------
# out = LN( W2 @ GELU(W1 @ x + b1) + b2 + x ), K-tiled over the intermediate dim

def _ffn_kernel(x_ref, w1_ref, b1_ref, w2_ref, b2_ref, g_ref, b_ref,
                o_ref, acc_ref):
    ki = pl.program_id(1)
    cdt = w1_ref.dtype

    @pl.when(ki == 0)
    def _():
        acc_ref[...] = jnp.zeros_like(acc_ref)

    x = x_ref[...]                                                  # (tm, H)
    h = jnp.dot(x.astype(cdt), w1_ref[...],
                preferred_element_type=jnp.float32)
    h = h + b1_ref[...].astype(jnp.float32)
    h = jax.nn.gelu(h, approximate=False)        # exact erf GELU == nn.GELU()
    acc_ref[...] += jnp.dot(h.astype(cdt), w2_ref[...],
                            preferred_element_type=jnp.float32)

    @pl.when(ki == pl.num_programs(1) - 1)
    def _():
        y = acc_ref[...] + b2_ref[...].astype(jnp.float32) + x.astype(jnp.float32)
        y = _layernorm_f32(y,
                           g_ref[...].astype(jnp.float32),
                           b_ref[...].astype(jnp.float32))
        o_ref[...] = y.astype(o_ref.dtype)


def ffn_block(x2, p, *, out_dtype, row_tile=256, inter_tile=2048):
    """x2:(M,H) -> LayerNorm(FFN(x2) + x2).  No padding: tm divides M."""
    M, H = x2.shape
    I = p["w1"].shape[1]
    tm = _pick_row_tile(M, row_tile)
    ti = _pick_lane_tile(I, inter_tile)

    return pl.pallas_call(
        _ffn_kernel,
        out_shape=jax.ShapeDtypeStruct((M, H), out_dtype),
        grid_spec=pltpu.PrefetchScalarGridSpec(
            num_scalar_prefetch=0,
            grid=(M // tm, I // ti),
            in_specs=[
                pl.BlockSpec((tm, H), lambda m, k: (m, 0)),
                # Streamed weight tiles (change with k): keep default 2-deep buffers.
                pl.BlockSpec((H, ti), lambda m, k: (0, k)),
                pl.BlockSpec((1, ti), lambda m, k: (0, k)),
                pl.BlockSpec((ti, H), lambda m, k: (k, 0)),
                # Constant-index blocks: single buffer.
                pl.BlockSpec((1, H), lambda m, k: (0, 0), pipeline_mode=pl.Buffered(1)),
                pl.BlockSpec((1, H), lambda m, k: (0, 0), pipeline_mode=pl.Buffered(1)),
                pl.BlockSpec((1, H), lambda m, k: (0, 0), pipeline_mode=pl.Buffered(1)),
            ],
            out_specs=pl.BlockSpec((tm, H), lambda m, k: (m, 0)),
            scratch_shapes=[pltpu.VMEM((tm, H), jnp.float32)],
        ),
        compiler_params=pltpu.CompilerParams(
            dimension_semantics=("parallel", "arbitrary"),
            vmem_limit_bytes=_VMEM_LIMIT),
    )(x2, p["w1"], p["b1"], p["w2"], p["b2"], p["ln_g"], p["ln_b"])


# ----------------------------- module forward -------------------------------

def flamant_layer_forward(pp, hidden_states, image_embeddings,
                          attention_mask=None, image_attention_mask=None,
                          *, num_heads):
    B, S, H = hidden_states.shape
    # Inter-kernel activations travel in the compute dtype (bf16 in production),
    # halving activation HBM traffic; statistics stay f32 inside the kernels.
    act_dt = pp["attention"]["q_w"].dtype
    out_dt = hidden_states.dtype

    # (1) image cross-attention; outer residual folded into the kernel epilogue
    x = attention_block(hidden_states, image_embeddings,
                        pp["image_crossattention"], image_attention_mask,
                        num_heads=num_heads, outer_residual=True, out_dtype=act_dt)

    # (2)+(3) image FFW + residual + LayerNorm, fused (I-tiled)
    x = ffn_block(x.reshape(B * S, H), pp["image_ffw"],
                  out_dtype=act_dt).reshape(B, S, H)

    # (4) self-attention (Q=K=V=x)
    a = attention_block(x, x, pp["attention"], attention_mask,
                        num_heads=num_heads, outer_residual=False, out_dtype=act_dt)

    # (5) BertIntermediate + BertOutput, fused (I-tiled)
    out = ffn_block(a.reshape(B * S, H), pp["ffn"],
                    out_dtype=out_dt).reshape(B, S, H)
    return out


# ------------------------------ param packing -------------------------------

def pack_params(params, num_heads, compute_dtype=jnp.bfloat16):
    """Pack/cast f32 reference params for the Pallas kernels:
       - 1/sqrt(head_dim) attention scale folded into the Q weight & bias
       - k/v weights concatenated into one (H, 2H) weight (single KV matmul)
       - matmul weights cast to `compute_dtype` (bf16 MXU, half the weight DMA)
       - biases / LayerNorm params kept in f32 (applied after f32 accumulation)
    """
    cdt = compute_dtype

    def attn(p):
        H = p["q_w"].shape[0]
        scale = 1.0 / ((H // num_heads) ** 0.5)
        return {
            "q_w": (p["q_w"] * scale).astype(cdt),
            "q_b": (p["q_b"] * scale)[None, :].astype(jnp.float32),
            "kv_w": jnp.concatenate([p["k_w"], p["v_w"]], axis=1).astype(cdt),
            "kv_b": jnp.concatenate([p["k_b"], p["v_b"]])[None, :].astype(jnp.float32),
            "o_w": p["o_w"].astype(cdt),
            "o_b": p["o_b"][None, :].astype(jnp.float32),
            "ln_g": p["ln_g"][None, :].astype(jnp.float32),
            "ln_b": p["ln_b"][None, :].astype(jnp.float32),
        }

    def ffn(w1, b1, w2, b2, g, b):
        return {
            "w1": w1.astype(cdt), "b1": b1[None, :].astype(jnp.float32),
            "w2": w2.astype(cdt), "b2": b2[None, :].astype(jnp.float32),
            "ln_g": g[None, :].astype(jnp.float32),
            "ln_b": b[None, :].astype(jnp.float32),
        }

    return {
        "image_crossattention": attn(params["image_crossattention"]),
        "attention": attn(params["attention"]),
        "image_ffw": ffn(params["image_ffw"]["w1"], params["image_ffw"]["b1"],
                         params["image_ffw"]["w2"], params["image_ffw"]["b2"],
                         params["ln"]["g"], params["ln"]["b"]),
        "ffn": ffn(params["intermediate"]["w"], params["intermediate"]["b"],
                   params["output"]["w"], params["output"]["b"],
                   params["output"]["ln_g"], params["output"]["ln_b"]),
    }


# ------------------------------- param init ---------------------------------

def init_params(key, H, intermediate, image_intermediate):
    ks = iter(jax.random.split(key, 24))

    def lin(din, dout):
        return (jax.random.normal(next(ks), (din, dout), jnp.float32) * 0.02,
                jax.random.normal(next(ks), (dout,), jnp.float32) * 0.02)

    def attn_block():
        qw, qb = lin(H, H); kw, kb = lin(H, H); vw, vb = lin(H, H); ow, ob = lin(H, H)
        return {"q_w": qw, "q_b": qb, "k_w": kw, "k_b": kb,
                "v_w": vw, "v_b": vb, "o_w": ow, "o_b": ob,
                "ln_g": jnp.ones((H,), jnp.float32),
                "ln_b": jnp.zeros((H,), jnp.float32)}

    params = {"image_crossattention": attn_block(), "attention": attn_block()}
    w1, b1 = lin(H, image_intermediate)
    w2, b2 = lin(image_intermediate, H)
    params["image_ffw"] = {"w1": w1, "b1": b1, "w2": w2, "b2": b2}
    params["ln"] = {"g": jnp.ones((H,), jnp.float32), "b": jnp.zeros((H,), jnp.float32)}
    wi, bi = lin(H, intermediate)
    wo, bo = lin(intermediate, H)
    params["intermediate"] = {"w": wi, "b": bi}
    params["output"] = {"w": wo, "b": bo,
                        "ln_g": jnp.ones((H,), jnp.float32),
                        "ln_b": jnp.zeros((H,), jnp.float32)}
    return params


# --------------------------- pure-JAX reference -----------------------------

def _ref_ln(x, g, b):
    mu = x.mean(-1, keepdims=True)
    var = ((x - mu) ** 2).mean(-1, keepdims=True)
    return (x - mu) / jnp.sqrt(var + LN_EPS) * g + b


def _ref_attn(p, hidden, kv, num_heads):
    B, S, H = hidden.shape
    L = kv.shape[1]
    hd = H // num_heads
    q = (hidden @ p["q_w"] + p["q_b"]).reshape(B, S, num_heads, hd).transpose(0, 2, 1, 3)
    k = (kv @ p["k_w"] + p["k_b"]).reshape(B, L, num_heads, hd).transpose(0, 2, 1, 3)
    v = (kv @ p["v_w"] + p["v_b"]).reshape(B, L, num_heads, hd).transpose(0, 2, 1, 3)
    s = jnp.einsum("bhqd,bhkd->bhqk", q, k) / (hd ** 0.5)
    pattn = jax.nn.softmax(s, axis=-1)
    ctx = jnp.einsum("bhqk,bhkd->bhqd", pattn, v).transpose(0, 2, 1, 3).reshape(B, S, H)
    return _ref_ln(ctx @ p["o_w"] + p["o_b"] + hidden, p["ln_g"], p["ln_b"])


def flamant_layer_reference(params, hidden, image, num_heads):
    x = _ref_attn(params["image_crossattention"], hidden, image, num_heads) + hidden
    h1 = jax.nn.gelu(x @ params["image_ffw"]["w1"] + params["image_ffw"]["b1"],
                     approximate=False)
    x = (h1 @ params["image_ffw"]["w2"] + params["image_ffw"]["b2"]) + x
    x = _ref_ln(x, params["ln"]["g"], params["ln"]["b"])
    a = _ref_attn(params["attention"], x, x, num_heads)
    inter = jax.nn.gelu(a @ params["intermediate"]["w"] + params["intermediate"]["b"],
                        approximate=False)
    return _ref_ln(inter @ params["output"]["w"] + params["output"]["b"] + a,
                   params["output"]["ln_g"], params["output"]["ln_b"])


# ---------------------------------- main ------------------------------------

if __name__ == "__main__":
    B, S, L, H = 2, 8, 16, 32          # batch, text seq, image seq, hidden
    NUM_HEADS = 4
    INTERMEDIATE = 64                  # config.intermediate_size
    IMAGE_INTERMEDIATE = 64            # config.image_intermediate_size

    key = jax.random.PRNGKey(0)
    k_params, k_hidden, k_image = jax.random.split(key, 3)
    params = init_params(k_params, H, INTERMEDIATE, IMAGE_INTERMEDIATE)
    hidden_states = jax.random.normal(k_hidden, (B, S, H), jnp.float32)
    image_embeddings = jax.random.normal(k_image, (B, L, H), jnp.float32)

    ref = flamant_layer_reference(params, hidden_states, image_embeddings, NUM_HEADS)

    # float32 MXU path: tight check against the pure-JAX reference
    out_f32 = flamant_layer_forward(pack_params(params, NUM_HEADS, jnp.float32),
                                    hidden_states, image_embeddings,
                                    attention_mask=None, image_attention_mask=None,
                                    num_heads=NUM_HEADS)
    out_f32 = jax.block_until_ready(out_f32)
    assert out_f32.shape == (B, S, H)
    assert bool(jnp.all(jnp.isfinite(out_f32)))
    assert bool(jnp.allclose(out_f32, ref, atol=2e-2, rtol=2e-2)), "f32 mismatch"

    # bfloat16 MXU path (bf16 weights + bf16 inter-kernel activations,
    # f32 accumulation / statistics): production configuration
    out_bf16 = flamant_layer_forward(pack_params(params, NUM_HEADS, jnp.bfloat16),
                                     hidden_states, image_embeddings,
                                     attention_mask=None, image_attention_mask=None,
                                     num_heads=NUM_HEADS)
    out_bf16 = jax.block_until_ready(out_bf16)
    assert out_bf16.shape == (B, S, H)
    assert bool(jnp.all(jnp.isfinite(out_bf16)))
    assert bool(jnp.allclose(out_bf16, ref, atol=2e-1, rtol=2e-1)), "bf16 mismatch"

    print("KERNEL_OK")
</pallas_src>

<mosaic_0001>
module attributes {stable_mosaic.version = 11 : i64} {
  func.func @kernel(%arg0: i32, %arg1: i32, %arg2: memref<1x8x32xf32, #tpu.memory_space<vmem>>, %arg3: memref<1x16x32xf32, #tpu.memory_space<vmem>>, %arg4: memref<32x32xf32, #tpu.memory_space<vmem>>, %arg5: memref<1x32xf32, #tpu.memory_space<vmem>>, %arg6: memref<32x64xf32, #tpu.memory_space<vmem>>, %arg7: memref<1x64xf32, #tpu.memory_space<vmem>>, %arg8: memref<32x32xf32, #tpu.memory_space<vmem>>, %arg9: memref<1x32xf32, #tpu.memory_space<vmem>>, %arg10: memref<1x32xf32, #tpu.memory_space<vmem>>, %arg11: memref<1x32xf32, #tpu.memory_space<vmem>>, %arg12: memref<1x8x32xf32, #tpu.memory_space<vmem>>, %arg13: memref<16x32xf32, #tpu.memory_space<vmem>>, %arg14: memref<16x32xf32, #tpu.memory_space<vmem>>, %arg15: memref<8x32xf32, #tpu.memory_space<vmem>>) attributes {dimension_semantics = [#tpu.dimension_semantics<parallel>, #tpu.dimension_semantics<arbitrary>], iteration_bounds = array<i64: 2, 1>, scalar_prefetch = 0 : i64, scratch_operands = 3 : i64, tpu.core_type = #tpu.core_type<tc>, window_params = [{transform_indices = @transform_0, window_bounds = array<i64: 1, 8, 32>}, {transform_indices = @transform_1, window_bounds = array<i64: 1, 16, 32>}, {pipeline_mode = #tpu.pipeline_mode<synchronous>, transform_indices = @transform_2, window_bounds = array<i64: 32, 32>}, {pipeline_mode = #tpu.pipeline_mode<synchronous>, transform_indices = @transform_3, window_bounds = array<i64: 1, 32>}, {pipeline_mode = #tpu.pipeline_mode<synchronous>, transform_indices = @transform_4, window_bounds = array<i64: 32, 64>}, {pipeline_mode = #tpu.pipeline_mode<synchronous>, transform_indices = @transform_5, window_bounds = array<i64: 1, 64>}, {pipeline_mode = #tpu.pipeline_mode<synchronous>, transform_indices = @transform_6, window_bounds = array<i64: 32, 32>}, {pipeline_mode = #tpu.pipeline_mode<synchronous>, transform_indices = @transform_7, window_bounds = array<i64: 1, 32>}, {pipeline_mode = #tpu.pipeline_mode<synchronous>, transform_indices = @transform_8, window_bounds = array<i64: 1, 32>}, {pipeline_mode = #tpu.pipeline_mode<synchronous>, transform_indices = @transform_9, window_bounds = array<i64: 1, 32>}, {transform_indices = @transform_10, window_bounds = array<i64: 1, 8, 32>}]} {
    %c0 = arith.constant 0 : index
    %c0_0 = arith.constant 0 : index
    %c0_1 = arith.constant 0 : index
    %0 = vector.load %arg2[%c0, %c0_0, %c0_1] : memref<1x8x32xf32, #tpu.memory_space<vmem>>, vector<1x8x32xf32>
    %1 = vector.shape_cast %0 : vector<1x8x32xf32> to vector<8x32xf32>
    %c0_i32 = arith.constant 0 : i32
    %2 = arith.cmpi eq, %arg1, %c0_i32 : i32
    %3 = arith.extui %2 : i1 to i32
    %c0_i32_2 = arith.constant 0 : i32
    %4 = arith.cmpi ne, %3, %c0_i32_2 : i32
    scf.if %4 {
      %c0_55 = arith.constant 0 : index
      %c0_56 = arith.constant 0 : index
      %c0_57 = arith.constant 0 : index
      %115 = vector.load %arg3[%c0_55, %c0_56, %c0_57] : memref<1x16x32xf32, #tpu.memory_space<vmem>>, vector<1x16x32xf32>
      %116 = vector.shape_cast %115 : vector<1x16x32xf32> to vector<16x32xf32>
      %c0_58 = arith.constant 0 : index
      %c0_59 = arith.constant 0 : index
      %117 = vector.load %arg6[%c0_58, %c0_59] : memref<32x64xf32, #tpu.memory_space<vmem>>, vector<32x64xf32>
      %cst_60 = arith.constant dense<0.000000e+00> : vector<16x64xf32>
      %118 = tpu.matmul %116, %117, %cst_60 {dimension_numbers = #tpu.dot_dimension_numbers<[1], [0], [0], [1], [0, 0, 1, 1], [], []>} : vector<16x32xf32>, vector<32x64xf32>, vector<16x64xf32> -> vector<16x64xf32>
      %c0_61 = arith.constant 0 : index
      %c0_62 = arith.constant 0 : index
      %119 = vector.load %arg7[%c0_61, %c0_62] : memref<1x64xf32, #tpu.memory_space<vmem>>, vector<1x64xf32>
      %120 = vector.broadcast %119 : vector<1x64xf32> to vector<16x64xf32>
      %121 = arith.addf %118, %120 : vector<16x64xf32>
      %122 = vector.extract_strided_slice %121 {offsets = [0, 0], sizes = [16, 32], strides = [1, 1]} : vector<16x64xf32> to vector<16x32xf32>
      %c0_63 = arith.constant 0 : index
      %c0_64 = arith.constant 0 : index
      %123 = vector.load %arg13[%c0_63, %c0_64] : memref<16x32xf32, #tpu.memory_space<vmem>>, vector<16x32xf32>
      tpu.vector_store %arg13[%c0_63, %c0_64], %122 {strides = array<i32>} : memref<16x32xf32, #tpu.memory_space<vmem>>, vector<16x32xf32>,
      %124 = vector.extract_strided_slice %121 {offsets = [0, 32], sizes = [16, 32], strides = [1, 1]} : vector<16x64xf32> to vector<16x32xf32>
      %c0_65 = arith.constant 0 : index
      %c0_66 = arith.constant 0 : index
      %125 = vector.load %arg14[%c0_65, %c0_66] : memref<16x32xf32, #tpu.memory_space<vmem>>, vector<16x32xf32>
      tpu.vector_store %arg14[%c0_65, %c0_66], %124 {strides = array<i32>} : memref<16x32xf32, #tpu.memory_space<vmem>>, vector<16x32xf32>,
    } else {
    }
    %c0_3 = arith.constant 0 : index
    %c0_4 = arith.constant 0 : index
    %5 = vector.load %arg4[%c0_3, %c0_4] : memref<32x32xf32, #tpu.memory_space<vmem>>, vector<32x32xf32>
    %cst = arith.constant dense<0.000000e+00> : vector<8x32xf32>
    %6 = tpu.matmul %1, %5, %cst {dimension_numbers = #tpu.dot_dimension_numbers<[1], [0], [0], [1], [0, 0, 1, 1], [], []>} : vector<8x32xf32>, vector<32x32xf32>, vector<8x32xf32> -> vector<8x32xf32>
    %c0_5 = arith.constant 0 : index
    %c0_6 = arith.constant 0 : index
    %7 = vector.load %arg5[%c0_5, %c0_6] : memref<1x32xf32, #tpu.memory_space<vmem>>, vector<1x32xf32>
    %8 = vector.broadcast %7 : vector<1x32xf32> to vector<8x32xf32>
    %9 = arith.addf %6, %8 : vector<8x32xf32>
    %c0_7 = arith.constant 0 : index
    %c0_8 = arith.constant 0 : index
    %10 = vector.load %arg13[%c0_7, %c0_8] : memref<16x32xf32, #tpu.memory_space<vmem>>, vector<16x32xf32>
    %c0_9 = arith.constant 0 : index
    %c0_10 = arith.constant 0 : index
    %11 = vector.load %arg14[%c0_9, %c0_10] : memref<16x32xf32, #tpu.memory_space<vmem>>, vector<16x32xf32>
    %12 = vector.extract_strided_slice %9 {offsets = [0, 0], sizes = [8, 8], strides = [1, 1]} : vector<8x32xf32> to vector<8x8xf32>
    %13 = vector.extract_strided_slice %10 {offsets = [0, 0], sizes = [16, 8], strides = [1, 1]} : vector<16x32xf32> to vector<16x8xf32>
    %cst_11 = arith.constant dense<0.000000e+00> : vector<8x16xf32>
    %14 = tpu.matmul %12, %13, %cst_11 {dimension_numbers = #tpu.dot_dimension_numbers<[1], [1], [0], [0], [0, 0, 1, 0], [], []>} : vector<8x8xf32>, vector<16x8xf32>, vector<8x16xf32> -> vector<8x16xf32>
    %cst_12 = arith.constant dense<0xFF800000> : vector<8xf32>
    %15 = vector.multi_reduction <maximumf>, %14, %cst_12 [1] : vector<8x16xf32> to vector<8xf32>
    %16 = vector.shape_cast %15 : vector<8xf32> to vector<8x1xf32>
    %17 = vector.broadcast %16 : vector<8x1xf32> to vector<8x16xf32>
    %18 = arith.subf %14, %17 : vector<8x16xf32>
    %19 = math.exp %18 : vector<8x16xf32>
    %cst_13 = arith.constant dense<0.000000e+00> : vector<8xf32>
    %20 = vector.multi_reduction <add>, %19, %cst_13 [1] : vector<8x16xf32> to vector<8xf32>
    %21 = vector.shape_cast %20 : vector<8xf32> to vector<8x1xf32>
    %cst_14 = arith.constant 1.000000e+00 : f32
    %22 = vector.broadcast %cst_14 : f32 to vector<8x1xf32>
    %23 = arith.divf %22, %21 : vector<8x1xf32>
    %24 = vector.broadcast %23 : vector<8x1xf32> to vector<8x16xf32>
    %25 = arith.mulf %19, %24 : vector<8x16xf32>
    %26 = vector.extract_strided_slice %11 {offsets = [0, 0], sizes = [16, 8], strides = [1, 1]} : vector<16x32xf32> to vector<16x8xf32>
    %cst_15 = arith.constant dense<0.000000e+00> : vector<8x8xf32>
    %27 = tpu.matmul %25, %26, %cst_15 {dimension_numbers = #tpu.dot_dimension_numbers<[1], [0], [0], [1], [0, 0, 1, 1], [], []>} : vector<8x16xf32>, vector<16x8xf32>, vector<8x8xf32> -> vector<8x8xf32>
    %c0_16 = arith.constant 0 : index
    %c0_17 = arith.constant 0 : index
    %28 = vector.load %arg15[%c0_16, %c0_17] : memref<8x32xf32, #tpu.memory_space<vmem>>, vector<8x8xf32>
    tpu.vector_store %arg15[%c0_16, %c0_17], %27 {strides = array<i32>} : memref<8x32xf32, #tpu.memory_space<vmem>>, vector<8x8xf32>,
    %29 = vector.extract_strided_slice %9 {offsets = [0, 8], sizes = [8, 8], strides = [1, 1]} : vector<8x32xf32> to vector<8x8xf32>
    %30 = vector.extract_strided_slice %10 {offsets = [0, 8], sizes = [16, 8], strides = [1, 1]} : vector<16x32xf32> to vector<16x8xf32>
    %cst_18 = arith.constant dense<0.000000e+00> : vector<8x16xf32>
    %31 = tpu.matmul %29, %30, %cst_18 {dimension_numbers = #tpu.dot_dimension_numbers<[1], [1], [0], [0], [0, 0, 1, 0], [], []>} : vector<8x8xf32>, vector<16x8xf32>, vector<8x16xf32> -> vector<8x16xf32>
    %cst_19 = arith.constant dense<0xFF800000> : vector<8xf32>
    %32 = vector.multi_reduction <maximumf>, %31, %cst_19 [1] : vector<8x16xf32> to vector<8xf32>
    %33 = vector.shape_cast %32 : vector<8xf32> to vector<8x1xf32>
    %34 = vector.broadcast %33 : vector<8x1xf32> to vector<8x16xf32>
    %35 = arith.subf %31, %34 : vector<8x16xf32>
    %36 = math.exp %35 : vector<8x16xf32>
    %cst_20 = arith.constant dense<0.000000e+00> : vector<8xf32>
    %37 = vector.multi_reduction <add>, %36, %cst_20 [1] : vector<8x16xf32> to vector<8xf32>
    %38 = vector.shape_cast %37 : vector<8xf32> to vector<8x1xf32>
    %cst_21 = arith.constant 1.000000e+00 : f32
    %39 = vector.broadcast %cst_21 : f32 to vector<8x1xf32>
    %40 = arith.divf %39, %38 : vector<8x1xf32>
    %41 = vector.broadcast %40 : vector<8x1xf32> to vector<8x16xf32>
    %42 = arith.mulf %36, %41 : vector<8x16xf32>
    %43 = vector.extract_strided_slice %11 {offsets = [0, 8], sizes = [16, 8], strides = [1, 1]} : vector<16x32xf32> to vector<16x8xf32>
    %cst_22 = arith.constant dense<0.000000e+00> : vector<8x8xf32>
    %44 = tpu.matmul %42, %43, %cst_22 {dimension_numbers = #tpu.dot_dimension_numbers<[1], [0], [0], [1], [0, 0, 1, 1], [], []>} : vector<8x16xf32>, vector<16x8xf32>, vector<8x8xf32> -> vector<8x8xf32>
    %c0_23 = arith.constant 0 : index
    %c8 = arith.constant 8 : index
    %45 = vector.load %arg15[%c0_23, %c8] : memref<8x32xf32, #tpu.memory_space<vmem>>, vector<8x8xf32>
    tpu.vector_store %arg15[%c0_23, %c8], %44 {strides = array<i32>} : memref<8x32xf32, #tpu.memory_space<vmem>>, vector<8x8xf32>,
    %46 = vector.extract_strided_slice %9 {offsets = [0, 16], sizes = [8, 8], strides = [1, 1]} : vector<8x32xf32> to vector<8x8xf32>
    %47 = vector.extract_strided_slice %10 {offsets = [0, 16], sizes = [16, 8], strides = [1, 1]} : vector<16x32xf32> to vector<16x8xf32>
    %cst_24 = arith.constant dense<0.000000e+00> : vector<8x16xf32>
    %48 = tpu.matmul %46, %47, %cst_24 {dimension_numbers = #tpu.dot_dimension_numbers<[1], [1], [0], [0], [0, 0, 1, 0], [], []>} : vector<8x8xf32>, vector<16x8xf32>, vector<8x16xf32> -> vector<8x16xf32>
    %cst_25 = arith.constant dense<0xFF800000> : vector<8xf32>
    %49 = vector.multi_reduction <maximumf>, %48, %cst_25 [1] : vector<8x16xf32> to vector<8xf32>
    %50 = vector.shape_cast %49 : vector<8xf32> to vector<8x1xf32>
    %51 = vector.broadcast %50 : vector<8x1xf32> to vector<8x16xf32>
    %52 = arith.subf %48, %51 : vector<8x16xf32>
    %53 = math.exp %52 : vector<8x16xf32>
    %cst_26 = arith.constant dense<0.000000e+00> : vector<8xf32>
    %54 = vector.multi_reduction <add>, %53, %cst_26 [1] : vector<8x16xf32> to vector<8xf32>
    %55 = vector.shape_cast %54 : vector<8xf32> to vector<8x1xf32>
    %cst_27 = arith.constant 1.000000e+00 : f32
    %56 = vector.broadcast %cst_27 : f32 to vector<8x1xf32>
    %57 = arith.divf %56, %55 : vector<8x1xf32>
    %58 = vector.broadcast %57 : vector<8x1xf32> to vector<8x16xf32>
    %59 = arith.mulf %53, %58 : vector<8x16xf32>
    %60 = vector.extract_strided_slice %11 {offsets = [0, 16], sizes = [16, 8], strides = [1, 1]} : vector<16x32xf32> to vector<16x8xf32>
    %cst_28 = arith.constant dense<0.000000e+00> : vector<8x8xf32>
    %61 = tpu.matmul %59, %60, %cst_28 {dimension_numbers = #tpu.dot_dimension_numbers<[1], [0], [0], [1], [0, 0, 1, 1], [], []>} : vector<8x16xf32>, vector<16x8xf32>, vector<8x8xf32> -> vector<8x8xf32>
    %c0_29 = arith.constant 0 : index
    %c16 = arith.constant 16 : index
    %62 = vector.load %arg15[%c0_29, %c16] : memref<8x32xf32, #tpu.memory_space<vmem>>, vector<8x8xf32>
    tpu.vector_store %arg15[%c0_29, %c16], %61 {strides = array<i32>} : memref<8x32xf32, #tpu.memory_space<vmem>>, vector<8x8xf32>,
    %63 = vector.extract_strided_slice %9 {offsets = [0, 24], sizes = [8, 8], strides = [1, 1]} : vector<8x32xf32> to vector<8x8xf32>
    %64 = vector.extract_strided_slice %10 {offsets = [0, 24], sizes = [16, 8], strides = [1, 1]} : vector<16x32xf32> to vector<16x8xf32>
    %cst_30 = arith.constant dense<0.000000e+00> : vector<8x16xf32>
    %65 = tpu.matmul %63, %64, %cst_30 {dimension_numbers = #tpu.dot_dimension_numbers<[1], [1], [0], [0], [0, 0, 1, 0], [], []>} : vector<8x8xf32>, vector<16x8xf32>, vector<8x16xf32> -> vector<8x16xf32>
    %cst_31 = arith.constant dense<0xFF800000> : vector<8xf32>
    %66 = vector.multi_reduction <maximumf>, %65, %cst_31 [1] : vector<8x16xf32> to vector<8xf32>
    %67 = vector.shape_cast %66 : vector<8xf32> to vector<8x1xf32>
    %68 = vector.broadcast %67 : vector<8x1xf32> to vector<8x16xf32>
    %69 = arith.subf %65, %68 : vector<8x16xf32>
    %70 = math.exp %69 : vector<8x16xf32>
    %cst_32 = arith.constant dense<0.000000e+00> : vector<8xf32>
    %71 = vector.multi_reduction <add>, %70, %cst_32 [1] : vector<8x16xf32> to vector<8xf32>
    %72 = vector.shape_cast %71 : vector<8xf32> to vector<8x1xf32>
    %cst_33 = arith.constant 1.000000e+00 : f32
    %73 = vector.broadcast %cst_33 : f32 to vector<8x1xf32>
    %74 = arith.divf %73, %72 : vector<8x1xf32>
    %75 = vector.broadcast %74 : vector<8x1xf32> to vector<8x16xf32>
    %76 = arith.mulf %70, %75 : vector<8x16xf32>
    %77 = vector.extract_strided_slice %11 {offsets = [0, 24], sizes = [16, 8], strides = [1, 1]} : vector<16x32xf32> to vector<16x8xf32>
    %cst_34 = arith.constant dense<0.000000e+00> : vector<8x8xf32>
    %78 = tpu.matmul %76, %77, %cst_34 {dimension_numbers = #tpu.dot_dimension_numbers<[1], [0], [0], [1], [0, 0, 1, 1], [], []>} : vector<8x16xf32>, vector<16x8xf32>, vector<8x8xf32> -> vector<8x8xf32>
    %c0_35 = arith.constant 0 : index
    %c24 = arith.constant 24 : index
    %79 = vector.load %arg15[%c0_35, %c24] : memref<8x32xf32, #tpu.memory_space<vmem>>, vector<8x8xf32>
    tpu.vector_store %arg15[%c0_35, %c24], %78 {strides = array<i32>} : memref<8x32xf32, #tpu.memory_space<vmem>>, vector<8x8xf32>,
    %c0_36 = arith.constant 0 : index
    %c0_37 = arith.constant 0 : index
    %80 = vector.load %arg15[%c0_36, %c0_37] : memref<8x32xf32, #tpu.memory_space<vmem>>, vector<8x32xf32>
    %c0_38 = arith.constant 0 : index
    %c0_39 = arith.constant 0 : index
    %81 = vector.load %arg8[%c0_38, %c0_39] : memref<32x32xf32, #tpu.memory_space<vmem>>, vector<32x32xf32>
    %cst_40 = arith.constant dense<0.000000e+00> : vector<8x32xf32>
    %82 = tpu.matmul %80, %81, %cst_40 {dimension_numbers = #tpu.dot_dimension_numbers<[1], [0], [0], [1], [0, 0, 1, 1], [], []>} : vector<8x32xf32>, vector<32x32xf32>, vector<8x32xf32> -> vector<8x32xf32>
    %c0_41 = arith.constant 0 : index
    %c0_42 = arith.constant 0 : index
    %83 = vector.load %arg9[%c0_41, %c0_42] : memref<1x32xf32, #tpu.memory_space<vmem>>, vector<1x32xf32>
    %84 = vector.broadcast %83 : vector<1x32xf32> to vector<8x32xf32>
    %85 = arith.addf %82, %84 : vector<8x32xf32>
    %86 = arith.addf %85, %1 : vector<8x32xf32>
    %c0_43 = arith.constant 0 : index
    %c0_44 = arith.constant 0 : index
    %87 = vector.load %arg10[%c0_43, %c0_44] : memref<1x32xf32, #tpu.memory_space<vmem>>, vector<1x32xf32>
    %c0_45 = arith.constant 0 : index
    %c0_46 = arith.constant 0 : index
    %88 = vector.load %arg11[%c0_45, %c0_46] : memref<1x32xf32, #tpu.memory_space<vmem>>, vector<1x32xf32>
    %cst_47 = arith.constant dense<0.000000e+00> : vector<8xf32>
    %89 = vector.multi_reduction <add>, %86, %cst_47 [1] : vector<8x32xf32> to vector<8xf32>
    %90 = vector.shape_cast %89 : vector<8xf32> to vector<8x1xf32>
    %cst_48 = arith.constant 3.200000e+01 : f32
    %91 = vector.broadcast %cst_48 : f32 to vector<8x1xf32>
    %92 = arith.divf %90, %91 : vector<8x1xf32>
    %93 = vector.broadcast %92 : vector<8x1xf32> to vector<8x32xf32>
    %94 = arith.subf %86, %93 : vector<8x32xf32>
    %95 = arith.mulf %94, %94 : vector<8x32xf32>
    %cst_49 = arith.constant dense<0.000000e+00> : vector<8xf32>
    %96 = vector.multi_reduction <add>, %95, %cst_49 [1] : vector<8x32xf32> to vector<8xf32>
    %97 = vector.shape_cast %96 : vector<8xf32> to vector<8x1xf32>
    %cst_50 = arith.constant 3.200000e+01 : f32
    %98 = vector.broadcast %cst_50 : f32 to vector<8x1xf32>
    %99 = arith.divf %97, %98 : vector<8x1xf32>
    %100 = vector.broadcast %92 : vector<8x1xf32> to vector<8x32xf32>
    %101 = arith.subf %86, %100 : vector<8x32xf32>
    %cst_51 = arith.constant 9.99999996E-13 : f32
    %102 = vector.broadcast %cst_51 : f32 to vector<8x1xf32>
    %103 = arith.addf %99, %102 : vector<8x1xf32>
    %104 = math.rsqrt %103 : vector<8x1xf32>
    %105 = vector.broadcast %104 : vector<8x1xf32> to vector<8x32xf32>
    %106 = arith.mulf %101, %105 : vector<8x32xf32>
    %107 = vector.broadcast %87 : vector<1x32xf32> to vector<8x32xf32>
    %108 = arith.mulf %106, %107 : vector<8x32xf32>
    %109 = vector.broadcast %88 : vector<1x32xf32> to vector<8x32xf32>
    %110 = arith.addf %108, %109 : vector<8x32xf32>
    %111 = arith.addf %110, %1 : vector<8x32xf32>
    %c0_52 = arith.constant 0 : index
    %c0_53 = arith.constant 0 : index
    %c0_54 = arith.constant 0 : index
    %112 = vector.load %arg12[%c0_52, %c0_53, %c0_54] : memref<1x8x32xf32, #tpu.memory_space<vmem>>, vector<1x8x32xf32>
    %113 = vector.shape_cast %112 : vector<1x8x32xf32> to vector<8x32xf32>
    %114 = vector.shape_cast %111 : vector<8x32xf32> to vector<1x8x32xf32>
    tpu.vector_store %arg12[%c0_52, %c0_53, %c0_54], %114 {strides = array<i32>} : memref<1x8x32xf32, #tpu.memory_space<vmem>>, vector<1x8x32xf32>,
    return
  }
  func.func @transform_0(%arg0: i32, %arg1: i32) -> (i32, i32, i32) {
    %c0_i32 = arith.constant 0 : i32
    %c0_i32_0 = arith.constant 0 : i32
    return %arg0, %arg1, %c0_i32 : i32, i32, i32
  }
  func.func @transform_1(%arg0: i32, %arg1: i32) -> (i32, i32, i32) {
    %c0_i32 = arith.constant 0 : i32
    %c0_i32_0 = arith.constant 0 : i32
    %c0_i32_1 = arith.constant 0 : i32
    return %arg0, %c0_i32, %c0_i32_0 : i32, i32, i32
  }
  func.func @transform_2(%arg0: i32, %arg1: i32) -> (i32, i32) {
    %c0_i32 = arith.constant 0 : i32
    %c0_i32_0 = arith.constant 0 : i32
    %c0_i32_1 = arith.constant 0 : i32
    return %c0_i32, %c0_i32_0 : i32, i32
  }
  func.func @transform_3(%arg0: i32, %arg1: i32) -> (i32, i32) {
    %c0_i32 = arith.constant 0 : i32
    %c0_i32_0 = arith.constant 0 : i32
    %c0_i32_1 = arith.constant 0 : i32
    return %c0_i32, %c0_i32_0 : i32, i32
  }
  func.func @transform_4(%arg0: i32, %arg1: i32) -> (i32, i32) {
    %c0_i32 = arith.constant 0 : i32
    %c0_i32_0 = arith.constant 0 : i32
    %c0_i32_1 = arith.constant 0 : i32
    return %c0_i32, %c0_i32_0 : i32, i32
  }
  func.func @transform_5(%arg0: i32, %arg1: i32) -> (i32, i32) {
    %c0_i32 = arith.constant 0 : i32
    %c0_i32_0 = arith.constant 0 : i32
    %c0_i32_1 = arith.constant 0 : i32
    return %c0_i32, %c0_i32_0 : i32, i32
  }
  func.func @transform_6(%arg0: i32, %arg1: i32) -> (i32, i32) {
    %c0_i32 = arith.constant 0 : i32
    %c0_i32_0 = arith.constant 0 : i32
    %c0_i32_1 = arith.constant 0 : i32
    return %c0_i32, %c0_i32_0 : i32, i32
  }
  func.func @transform_7(%arg0: i32, %arg1: i32) -> (i32, i32) {
    %c0_i32 = arith.constant 0 : i32
    %c0_i32_0 = arith.constant 0 : i32
    %c0_i32_1 = arith.constant 0 : i32
    return %c0_i32, %c0_i32_0 : i32, i32
  }
  func.func @transform_8(%arg0: i32, %arg1: i32) -> (i32, i32) {
    %c0_i32 = arith.constant 0 : i32
    %c0_i32_0 = arith.constant 0 : i32
    %c0_i32_1 = arith.constant 0 : i32
    return %c0_i32, %c0_i32_0 : i32, i32
  }
  func.func @transform_9(%arg0: i32, %arg1: i32) -> (i32, i32) {
    %c0_i32 = arith.constant 0 : i32
    %c0_i32_0 = arith.constant 0 : i32
    %c0_i32_1 = arith.constant 0 : i32
    return %c0_i32, %c0_i32_0 : i32, i32
  }
  func.func @transform_10(%arg0: i32, %arg1: i32) -> (i32, i32, i32) {
    %c0_i32 = arith.constant 0 : i32
    %c0_i32_0 = arith.constant 0 : i32
    return %arg0, %arg1, %c0_i32 : i32, i32, i32
  }
}

</mosaic_0001>

<bundles_post_ra>
// kernel: tpu_custom_call.1
= control target key start
LH: loop header
LB: loop body
LE: loop exit
PB: predicated region body
PF: predicated region fallthrough
CT: control target
= control target key end

     0   :  { %s2800_s0 = inlined_call_operand.hbm [shape: f32[2,8,32], index: 0, kind: input, shape index: {}]   ;;  %s2801_s1 = inlined_call_operand.hbm [shape: f32[2,16,32], index: 1, kind: input, shape index: {}]   ;;  %s2802_s2 = inlined_call_operand.hbm [shape: f32[32,32], index: 2, kind: input, shape index: {}]   ;;  %s2803_s3 = inlined_call_operand.vmem [shape: f32[1,32], index: 3, kind: input, shape index: {}]   ;;  %s2804_s4 = inlined_call_operand.hbm [shape: f32[32,64], index: 4, kind: input, shape index: {}]   ;;  %s2805_s5 = inlined_call_operand.vmem [shape: f32[1,64], index: 5, kind: input, shape index: {}]   ;;  %s2806_s6 = inlined_call_operand.hbm [shape: f32[32,32], index: 6, kind: input, shape index: {}]   ;;  %s2807_s7 = inlined_call_operand.vmem [shape: f32[1,32], index: 7, kind: input, shape index: {}]   ;;  %s2808_s8 = inlined_call_operand.vmem [shape: f32[1,32], index: 8, kind: input, shape index: {}]   ;;  %s2809_s9 = inlined_call_operand.vmem [shape: f32[1,32], index: 9, kind: input, shape index: {}]   ;;  %s2810_s10 = inlined_call_operand.hbm [shape: f32[2,8,32], index: 10, kind: output, shape index: {}]  }
   0x1   :  { %2819 = sst [smem:[#allocation23_spill]] %s2800_s0 }
   0x2   :  { %2820 = sst [smem:[#allocation24_spill]] %s2802_s2 }
   0x3   :  { %2821 = sst [smem:[#allocation25_spill]] %s2808_s8 }
   0x4   :  { %2822 = sst [smem:[#allocation26_spill]] %s2809_s9 }
   0x5   :  { %2823 = sst [smem:[#allocation27_spill]] %s2810_s10 }
   0x6   :  { %15 = vsyncpa [#allocation6], 0 }
   0x7   :  { %17 = vsyncpa [#allocation6 + $0x1], 0 }
   0x8   :  { %18 = vsyncpa [#allocation9], 0 }
   0x9   :  { %20 = vsyncpa [#allocation9 + $0x1], 0 }
   0xa   :  { %21 = vsyncpa [#allocation12], 0 }
   0xb   :  { %22 = vsyncpa [#allocation7], 0 }
   0xc   :  { %24 = vsyncpa [#allocation7 + $0x1], 0  ;;  %s2343_s13 = smov 0   ;;  %s2345_s14 = smov 0  }
   0xd   :  { %s2347_s15 = smov 0   ;;  %s2349_s16 = smov 0  }
   0xe   :  { %s2351_s17 = smov 0   ;;  %s2353_s18 = smov 0  }
   0xf LB: > { %2824 = sst [smem:[#allocation20_spill]] %s2248_s13  ;;  %s2374_s19 = sadd.s32 4294967295, %s2268_s18   ;;  %s2268_s18 = sphi %s2353_s18, %s30_s18   ;;  %s2264_s17 = sphi %s2351_s17, %s2860_s17   ;;  %s2260_s16 = sphi %s2349_s16, %s2859_s16   ;;  %s2256_s15 = sphi %s2347_s15, %s2858_s15   ;;  %s2252_s14 = sphi %s2345_s14, %s2857_s14   ;;  %s2248_s13 = sphi %s2343_s13, %s2856_s13  }
  0x10   : > { %2825 = sst [smem:[#allocation21_spill]] %s2260_s16  ;;  %s1647_s20 = sadd.s32 4294967294, %s2268_s18  }
  0x11   : > { %p64_p0 = scmp.ne.s32.totalorder %s2252_s14, %s2248_s13  ;;  %p2813_p1 = scmp.eq.s32.totalorder %s2374_s19, 0 }
  0x12   : > { %p290_p3 = scmp.eq.s32.totalorder %s1647_s20, 1  ;;  %p1648_p5 = scmp.ge.s32.totalorder %s2268_s18, 1 }
  0x13   : > { %p2383_p4 = por %p2813_p1, %p64_p0  ;;  %p297_p7 = scmp.lt.s32.totalorder %s2268_s18, 3 }
  0x14   : > { %p2388_p6 = por %p290_p3, %p64_p0  ;;  %s2270_s24 = smov [#allocation10]  }
  0x15   : > { %s2826_s21 = scalar_select %p2383_p4, 1, 0 }
  0x16   : > { %s2827_s22 = scalar_select %p2388_p6, 1, 0 }
  0x17   : > { %p2393_p8 = pnand %p1648_p5, %p297_p7  ;;  %s309_s25 = sshll.u32 %s2270_s24, 4  ;;  %s2397_s25 = int_to_ptr.vmem [resolvable:$true] %s309_s25 }
  0x18   : > { %2828 = sst [smem:[#allocation22_spill]] %s2827_s22  ;;  %s2271_s27 = smov [#allocation11]  }
  0x19   : > { %s2829_s23 = scalar_select %p2393_p8, 1, 0 }
  0x1a   : > { %p1890_p9 = pneg %p2393_p8  ;;  %s325_s28 = sshll.u32 %s2271_s27, 4  ;;  %s2408_s28 = int_to_ptr.vmem [resolvable:$true] %s325_s28 }
  0x1b   : > { %s2272_s29 = smov [#allocation13]   ;;  %s2831_s2 = sld [smem:[#allocation24_spill]] }
  0x1c   : > { %p2404_p11 = pnand %p1890_p9, %p2813_p1  ;;  %s2410_s30 = sshll.u32 %s2272_s29, 4  ;;  %s342_s30 = int_to_ptr.vmem [resolvable:$true] %s2410_s30 }
  0x1e   : > { %p2420_p13 = pneg %p2404_p11 }
  0x21   : > { %s2030_s20 = scalar_lea.hbm %s2831_s2, 512 }
  0x22   : > { %p2031_p12 = scmp.ne.s32.totalorder %s2831_s2, %s2030_s20  ;;  %p2037_p5 = scmp.lt.u32.totalorder %s2030_s20, %s2831_s2 }
  0x24   : > { %p2033_p0 = pnand %p2420_p13, %p2031_p12 }
  0x26   : > { %p2034_p3 = pneg %p2033_p0 }
  0x28   : > { %p2039_p7 = pnand %p2037_p5, %p2034_p3 }
  0x2a   : > { %2042 = shalt.err (!%p2039_p7)
}
  0x2b   : > { %s2043_s22 = scalar_lea.vmem %s2397_s25, 512  ;;  %p2051_p2 = scmp.lt.s32.totalorder %s2397_s25, %s2397_s25 }
  0x2c   : > { %p2044_p9 = scmp.ne.s32.totalorder %s2397_s25, %s2043_s22  ;;  %p2052_p6 = scmp.lt.s32.totalorder %s2043_s22, %s2043_s22 }
  0x2e   : > { %p2046_p10 = pnand %p2044_p9, %p2420_p13  ;;  %p2053_p12 = por %p2052_p6, %p2051_p2 }
  0x30   : > { %p2047_p1 = pneg %p2046_p10 }
  0x32   : > { %p2054_p0 = pnand %p2053_p12, %p2047_p1 }
  0x34   : > { %2057 = shalt.err (!%p2054_p0)
}
  0x35   : > { %s2817_s11 = smov 128   ;;  %s2818_s12 = smov 8  }
  0x36   : > { %1893 = dma.hbm_to_vmem [thread:$0]  (!%p2404_p11), %s2831_s2, 512, %s2397_s25, [#allocation9], %s2817_s11, %s2817_s11, %s2818_s12  }
  0x37   : > { %s2058_s22 = scalar_lea.hbm %s2804_s4, 512 }
  0x38   : > { %p2059_p1 = scmp.ne.s32.totalorder %s2804_s4, %s2058_s22  ;;  %p2065_p10 = scmp.lt.u32.totalorder %s2058_s22, %s2804_s4 }
  0x3a   : > { %p2061_p2 = pnand %p2059_p1, %p2420_p13 }
  0x3c   : > { %p2062_p6 = pneg %p2061_p2 }
  0x3e   : > { %p2067_p3 = pnand %p2065_p10, %p2062_p6 }
  0x40   : > { %2070 = shalt.err (!%p2067_p3)
}
  0x41   : > { %s2071_s25 = scalar_lea.vmem %s2408_s28, 512  ;;  %p2079_p12 = scmp.lt.s32.totalorder %s2408_s28, %s2408_s28 }
  0x42   : > { %p2072_p5 = scmp.ne.s32.totalorder %s2408_s28, %s2071_s25  ;;  %p2080_p0 = scmp.lt.s32.totalorder %s2071_s25, %s2071_s25 }
  0x44   : > { %p2074_p7 = pnand %p2072_p5, %p2420_p13  ;;  %p2081_p1 = por %p2080_p0, %p2079_p12 }
  0x46   : > { %p2075_p9 = pneg %p2074_p7 }
  0x48   : > { %p2082_p2 = pnand %p2081_p1, %p2075_p9 }
  0x4a   : > { %2085 = shalt.err (!%p2082_p2)
}
  0x4b   : > { %1896 = dma.hbm_to_vmem [thread:$0]  (!%p2404_p11), %s2804_s4, 512, %s2408_s28, [#allocation12], %s2817_s11, %s2817_s11, %s2818_s12  }
  0x4c   : > { %s2086_s20 = scalar_lea.hbm %s2806_s6, 512 }
  0x4d   : > { %p2087_p6 = scmp.ne.s32.totalorder %s2806_s6, %s2086_s20  ;;  %p2093_p5 = scmp.lt.u32.totalorder %s2086_s20, %s2806_s6 }
  0x4f   : > { %p2089_p10 = pnand %p2087_p6, %p2420_p13 }
  0x51   : > { %p2090_p3 = pneg %p2089_p10 }
  0x53   : > { %p2095_p7 = pnand %p2093_p5, %p2090_p3 }
  0x55   : > { %2098 = shalt.err (!%p2095_p7)
}
  0x56   : > { %s2099_s25 = scalar_lea.vmem %s342_s30, 512  ;;  %p2107_p1 = scmp.lt.s32.totalorder %s342_s30, %s342_s30 }
  0x57   : > { %p2100_p9 = scmp.ne.s32.totalorder %s342_s30, %s2099_s25  ;;  %p2108_p2 = scmp.lt.s32.totalorder %s2099_s25, %s2099_s25 }
  0x59   : > { %p2102_p12 = pnand %p2100_p9, %p2420_p13  ;;  %p2109_p4 = por %p2108_p2, %p2107_p1 }
  0x5b   : > { %p2103_p0 = pneg %p2102_p12 }
  0x5d   : > { %p2110_p8 = pnand %p2109_p4, %p2103_p0 }
  0x5f   : > { %2113 = shalt.err (!%p2110_p8)
}
  0x60   : > { %1899 = dma.hbm_to_vmem [thread:$0]  (!%p2404_p11), %s2806_s6, 512, %s342_s30, [#allocation12], %s2817_s11, %s2817_s11, %s2818_s12  }
  0x61   : > { %s51_s13 = sadd.s32 1, %s2256_s15  ;;  %s42_s26 = sadd.s32 1, %s2264_s17 }
  0x62   : > { %p58_p4 = scmp.ne.s32.totalorder %s2256_s15, %s2252_s14  ;;  %p44_p8 = scmp.ge.s32.totalorder %s42_s26, 2 }
  0x63   : > { %p59_p13 = scmp.eq.s32.totalorder %s2268_s18, 0  ;;  %p2833_p6 = scmp.eq.s32.totalorder %s2374_s19, 1 }
  0x64   : > { %p1914_p3 = scmp.lt.s32.totalorder %s2268_s18, 2  ;;  %s2862_s26 = smov (%p44_p8, %s42_s26), 0 }
  0x65   : > { %p2499_p10 = por %p2833_p6, %p58_p4  ;;  %p60_p5 = por %p59_p13, %p58_p4 }
  0x66   : > { %s2507_s10 = sand.u32 1, %s2256_s15   ;;  %s46_s30 = ssub.s32 %s2264_s17, %s2862_s26 }
  0x67   : > { %p49_p11 = scmp.eq.s32.totalorder %s46_s30, 0  ;;  %s1653_s16 = sshll.u32 %s2507_s10, 3 }
  0x68   : > { %s1654_s20 = sshll.u32 %s2264_s17, 7  ;;  %s2835_s0 = sld [smem:[#allocation23_spill]] }
  0x69   : > { %s2514_s24 = scalar_select %p49_p11, %s2256_s15, %s51_s13  }
  0x6a   : > { %s368_s25 = scalar_lea.vmem [#allocation5], %s1653_s16  ;;  %p2525_p7 = pnand %p1914_p3, %p60_p5 }
  0x6b   : > { %s376_s28 = sshll.u32 %s368_s25, 4  ;;  %s1655_s13 = sshll.u32 %s2507_s10, 4  ;;  %s2521_s28 = int_to_ptr.vmem [resolvable:$true] %s376_s28 }
  0x6c   : > { %s365_s27 = scalar_lea.sflag [#allocation6], %s2507_s10  ;;  %p2116_p12 = pneg %p2525_p7 }
  0x6e   : > { %s2519_s22 = scalar_lea.hbm %s2835_s0, %s1654_s20  ;;  %s2119_s25 = scalar_lea.hbm %s2835_s0, 256 }
  0x6f   : > { %s2114_s20 = scalar_lea.hbm %s2519_s22, 128  ;;  %p2120_p2 = scmp.lt.u32.totalorder %s2519_s22, %s2835_s0 }
  0x70   : > { %p2115_p9 = scmp.ne.s32.totalorder %s2519_s22, %s2114_s20  ;;  %p2121_p4 = scmp.lt.u32.totalorder %s2119_s25, %s2114_s20 }
  0x71   : > { %p2123_p13 = scmp.lt.u32.totalorder %s2114_s20, %s2519_s22 }
  0x72   : > { %p2117_p0 = pnand %p2116_p12, %p2115_p9  ;;  %p2122_p8 = por %p2121_p4, %p2120_p2 }
  0x74   : > { %p2118_p1 = pneg %p2117_p0  ;;  %p2124_p6 = por %p2123_p13, %p2122_p8 }
  0x76   : > { %p2125_p3 = pnand %p2124_p6, %p2118_p1 }
  0x78   : > { %2128 = shalt.err (!%p2125_p3)
}
  0x79   : > { %s2129_s30 = scalar_lea.vmem %s2521_s28, 128  ;;  %s2275_s16 = smov [#allocation5]  }
  0x7a   : > { %p2130_p5 = scmp.ne.s32.totalorder %s2521_s28, %s2129_s30  ;;  %s2134_s29 = sshll.u32 %s2275_s16, 4  ;;  %s2135_s29 = int_to_ptr.vmem [resolvable:$false] %s2134_s29 }
  0x7b   : > { %s2136_s11 = scalar_lea.vmem %s2135_s29, 256  ;;  %p2137_p0 = scmp.lt.s32.totalorder %s2521_s28, %s2135_s29 }
  0x7c   : > { %p2132_p11 = pnand %p2130_p5, %p2116_p12  ;;  %p2138_p2 = scmp.lt.s32.totalorder %s2136_s11, %s2129_s30 }
  0x7e   : > { %p2133_p9 = pneg %p2132_p11  ;;  %p2139_p4 = por %p2138_p2, %p2137_p0 }
  0x80   : > { %p2140_p8 = pnand %p2139_p4, %p2133_p9 }
  0x82   : > { %2143 = shalt.err (!%p2140_p8)
}
  0x83   : > { %1903 = dma.hbm_to_vmem [thread:$0]  (!%p2525_p7), %s2519_s22, 128, %s2521_s28, %s365_s27  }
  0x84   : > { %s387_s12 = scalar_lea.vmem [#allocation8], %s1655_s13  ;;  %s383_s25 = sand.u32 1, %s2268_s18  }
  0x85   : > { %s394_s20 = sshll.u32 %s387_s12, 4  ;;  %s2837_s16 = sshll.u32 %s2264_s17, 8  ;;  %s2560_s20 = int_to_ptr.vmem [resolvable:$true] %s394_s20 }
  0x86   : > { %s2567_s11 = scalar_lea.hbm %s2801_s1, %s2837_s16  ;;  %s2569_s0 = scalar_lea.sflag [#allocation9], %s383_s25 }
  0x87   : > { %s2144_s2 = scalar_lea.hbm %s2567_s11, 256  ;;  %s2149_s28 = scalar_lea.hbm %s2801_s1, 512 }
  0x88   : > { %p2145_p1 = scmp.ne.s32.totalorder %s2567_s11, %s2144_s2  ;;  %p2150_p3 = scmp.lt.u32.totalorder %s2567_s11, %s2801_s1 }
  0x89   : > { %p2151_p5 = scmp.lt.u32.totalorder %s2149_s28, %s2144_s2  ;;  %p2153_p9 = scmp.lt.u32.totalorder %s2144_s2, %s2567_s11 }
  0x8a   : > { %p2147_p13 = pnand %p2145_p1, %p2116_p12 }
  0x8b   : > { %p2152_p11 = por %p2151_p5, %p2150_p3 }
  0x8c   : > { %p2148_p6 = pneg %p2147_p13 }
  0x8d   : > { %p2154_p0 = por %p2153_p9, %p2152_p11 }
  0x8f   : > { %p2155_p2 = pnand %p2154_p0, %p2148_p6 }
  0x91   : > { %2158 = shalt.err (!%p2155_p2)
}
  0x92   : > { %s2159_s12 = scalar_lea.vmem %s2560_s20, 256  ;;  %s2276_s25 = smov [#allocation8]  }
  0x93   : > { %p2160_p4 = scmp.ne.s32.totalorder %s2560_s20, %s2159_s12  ;;  %s2164_s16 = sshll.u32 %s2276_s25, 4  ;;  %s2165_s16 = int_to_ptr.vmem [resolvable:$false] %s2164_s16 }
  0x94   : > { %s2166_s30 = scalar_lea.vmem %s2165_s16, 512  ;;  %p2167_p13 = scmp.lt.s32.totalorder %s2560_s20, %s2165_s16 }
  0x95   : > { %p2162_p8 = pnand %p2160_p4, %p2116_p12  ;;  %p2168_p3 = scmp.lt.s32.totalorder %s2166_s30, %s2159_s12 }
  0x97   : > { %p2163_p1 = pneg %p2162_p8  ;;  %p2169_p5 = por %p2168_p3, %p2167_p13 }
  0x99   : > { %p2170_p11 = pnand %p2169_p5, %p2163_p1 }
  0x9b   : > { %2173 = shalt.err (!%p2170_p11)
}
  0x9c   : > { %s2838_s2 = smov 8   ;;  %s2839_s29 = smov 128  }
  0x9d   : > { %1906 = dma.hbm_to_vmem [thread:$0]  (!%p2525_p7), %s2567_s11, 256, %s2560_s20, %s2569_s0, %s2839_s29, %s2839_s29, %s2838_s2  }
  0x9e   : > { %p2840_p12 = scmp.ne.s32.totalorder %s2829_s23, 0 }
  0x9f   : > { %s2601_s10 = sand.u32 (!%p2840_p12), 1, %s2252_s14   ;;  %p2841_p6 = scmp.ne.s32.totalorder (!%p2840_p12), %s2826_s21, 0 }
  0xa0   : > { %406 = sbr.rel (%p2840_p12) target bundleno = 2903 (0xb57), region = 60  ;;  %s1659_s22 = sshll.u32 (!%p2840_p12), %s2601_s10, 3 }
  0xa1   : > { %s409_s28 = scalar_lea.sflag (!%p2840_p12), [#allocation6], %s2601_s10  ;;  %s2607_s8 = scalar_lea.vmem (!%p2840_p12), [#allocation5], %s1659_s22 }
  0xa7   : > { %2227 = dma.done.wait (%p2841_p6), %s409_s28, 128  }
  0xa8   : > { %2229 = vsyncadd (%p2841_p6), %s409_s28, 4294967168  ;;  %s417_s0 = sand.u32 1, %s2374_s19   ;;  %s1660_s23 = sshll.u32 %s2601_s10, 4 }
  0xa9   : > { %s418_s20 = scalar_lea.sflag [#allocation9], %s417_s0  ;;  %s2615_s11 = scalar_lea.vmem [#allocation8], %s1660_s23 }
  0xaa   : > { %2231 = dma.done.wait (%p2841_p6), %s418_s20, 256  }
  0xab   : > { %2233 = vsyncadd (%p2841_p6), %s418_s20, 4294967040  ;;  %p2842_p7 = scmp.eq.s32.totalorder %s2374_s19, 0 }
  0xad   : > { %2235 = dma.done.wait (%p2842_p7), [#allocation9], 512   ;;  %p2843_p9 = pmov %p2842_p7 }
  0xae   : > { %p2844_p0 = pmov %p2842_p7 }
  0xaf   : > { %2237 = vsyncadd (%p2843_p9), [#allocation9], 4294966784 }
  0xb0   : > { %2239 = dma.done.wait (%p2844_p0), [#allocation12], 1024   ;;  %p2845_p2 = pmov %p2844_p0 }
  0xb1   : > { %v2277_v0 = vmov 0.0|0.0   ;;  %vm2278_vm0 = vmmov 0   ;;  %v2279_v1 = vmov 0.0   ;;  %vm493_vm1 = vcmask 261120   ;;  %v482_v2 = vld [vmem:[#allocation11] sm:$0xff]  ;;  %v483_v3 = vld [vmem:[#allocation11 + $0x8] sm:$0xff] }
  0xb2   : > { %2241 = vsyncadd (%p2845_p2), [#allocation12], 4294966272  ;;  %1832 = vmatprep.subr.bf16.mxu1 %v2277_v0  ;;  %1754 = vmatprep.mubr.msk.f32.mxu1 %vm2278_vm0, %v2279_v1  ;;  %v484_v4 = vld [vmem:[#allocation11 + $0x10] sm:$0xff]  ;;  %v1824_v5 = vpack.c.bf16 %v483_v3, %v482_v2  ;;  %v485_v6 = vld [vmem:[#allocation11 + $0x18] sm:$0xff]  ;;  %s2280_s13 = smov 96   ;;  %vm676_vm2 = vcmask 64512  }
  0xb3   : > { %v480_v7 = vld [vmem:[%s2615_s11] sm:$0xff]  ;;  %v1828_v8 = vpack.c.bf16 %v485_v6, %v484_v4  ;;  %v588_v10 = vld [vmem:[#allocation10 + $0x8] sm:$0xff]  ;;  %v590_v13 = vld [vmem:[#allocation10 + $0x18] sm:$0xff]  ;;  %s2281_s25 = smov 120   ;;  %s2282_s16 = smov 112   ;;  %vm756_vm4 = vcmask 130048  }
  0xb4   : > { %1743 = vmatprep.mubr.msk.f32.mxu0 %vm493_vm1, %v480_v7  ;;  %v587_v9 = vld [vmem:[#allocation10] sm:$0xff]  ;;  %v589_v11 = vld [vmem:[#allocation10 + $0x10] sm:$0xff]  ;;  %1825 = vmatprep.subr.bf16.mxu0 %v1824_v5  ;;  %v481_v15 = vld [vmem:[%s2615_s11 + $0x8] sm:$0xff]  ;;  %s2283_s30 = smov 104   ;;  %s2284_s2 = smov 8   ;;  %vm1022_vm5 = vcmask 130112  }
  0xb5   : > { %v1833_v12 = vpack.c.bf16 %v588_v10, %v587_v9  ;;  %1827 = vmatpush3.bf16.msra.mxu0 %v1824_v5  ;;  %v1836_v14 = vpack.c.bf16 %v590_v13, %v589_v11  ;;  %v2637_v16 = vld [vmem:[%s2607_s8] sm:$0xff]  ;;  %v1665_v17 = vld [vmem:[%s2805_s5] ss:$0 sm:$0xff]  ;;  %vm2658_vm3 = vmpackc.low %vm676_vm2, %vm676_vm2  ;;  %s2285_s29 = smov 16   ;;  %vm1201_vm6 = vcmask 195712   ;;  %s2286_s28 = smov 24  }
  0xb6   : > { %1829 = vmatprep.subr.bf16.mxu0 %v1828_v8  ;;  %v1668_v24 = vld [vmem:[%s2803_s3] ss:$0 sm:$0xff]  ;;  %vm1380_vm7 = vcmask 261312   ;;  %s2848_s23 = sld [smem:[#allocation21_spill]]  ;;  %s2849_s19 = sld [smem:[#allocation25_spill]] }
  0xb7   : > { %1834 = vmatpush3.bf16.msra.mxu1 %v1833_v12  ;;  %s2850_s27 = sld [smem:[#allocation26_spill]]  ;;  %s1501_s8 = scalar_lea.sflag [#allocation7], %s2601_s10 }
  0xb8   : > { %1835 = vmatprep.subr.bf16.mxu1 %v2277_v0 }
  0xb9   : > { %1831 = vmatpush3.bf16.msra.mxu0 %v1828_v8 }
  0xba   : > { %1838 = vmatprep.subr.bf16.mxu0 %v2277_v0 }
  0xbb   : > { %1837 = vmatpush3.bf16.msra.mxu1 %v1836_v14 }
  0xbc   : > { %1842 = vmatprep.subr.bf16.mxu1 %v2277_v0  ;;  %1744 = vmatmul.mubr.msk.f32.vlgmr.msra.gmra.mrb[0].mxu0 %vm493_vm1, %v481_v15  ;;  %s1691_s12 = sshll.u32 %s2848_s23, 7 }
  0xbd   : > { %1761 = vmatprep.mubr.msk.f32.mxu0 %vm2278_vm0, %v2279_v1 }
  0xbe   : > { %1755 = vmatmul.mubr.msk.f32.vlgmr.msra.gmra.mrb[0].mxu1 %vm493_vm1, %v2637_v16 }
  0xbf   : > { %1768 = vmatprep.mubr.msk.f32.mxu1 %vm2278_vm0, %v2279_v1 }
 0x18f   : > { %v1745_v18 = vpop.f32.mrb[0].mxu0 }
 0x190   : > { %v572_v19 = vadd.f32 %v1745_v18, %v1665_v17  ;;  %v566_v20 = vpop.f32.mrb[1].mxu0 }
 0x191   : > { %v668_v21 = vpop.f32.mrb[0].mxu1  ;;  %v567_v22 = vadd.f32 %v1665_v17, %v566_v20 }
 0x192   : > { %v1756_v23 = vpop.f32.mrb[1].mxu1  ;;  %576 = vst.msk [vmem:[#allocation2 + $0x8] sm:$0xff] %vm493_vm1, %v572_v19  ;;  %v669_v25 = vadd.f32 %v1668_v24, %v668_v21 }
 0x193   : > { %575 = vst.msk [vmem:[#allocation2] sm:$0xff] %vm493_vm1, %v567_v22  ;;  %579 = vrot.lane.b32.xlu1 %v567_v22, %s2280_s13 }
 0x197   : > { %581 = vrot.lane.b32.xlu1 %v572_v19, %s2280_s13 }
 0x199   : > { %v673_v26 = vld [vmem:[#allocation2 + $0x8] sm:$0xff] }
 0x19a   : > { %v672_v27 = vld [vmem:[#allocation2] sm:$0xff] }
 0x19b   : > { %843 = vrot.lane.b32.xlu1 %v669_v25, %s2281_s25  ;;  %v1839_v29 = vpack.c.bf16 %v673_v26, %v672_v27  ;;  %v2663_v30 = vpack.i.bf16 %v673_v26, %v672_v27 }
 0x19d   : > { %1841 = vmatpush3.bf16.xpose.msk.msra.mxu0 %vm2658_vm3, %v1839_v29 }
 0x19e   : > { %1852 = vmatprep.subr.bf16.mxu0 %v2277_v0 }
 0x19f   : > { %1988 = vrot.lane.b32.xlu1 %v2663_v30, %s2282_s16 }
 0x1a3   : > { %1024 = vrot.lane.b32.xlu1 %v669_v25, %s2282_s16 }
 0x1a4   : > { %1762 = vmatmul.mubr.msk.f32.vlgmr.msra.gmra.mrb[2].mxu0 %vm676_vm2, %v669_v25 }
 0x1a5   : > { %1789 = vmatprep.mubr.msk.f32.mxu0 %vm2278_vm0, %v2279_v1 }
 0x205   : > { %v580_v31 = vpop.permute.xlu1 %579 }
 0x206   : > { %585 = vst.msk [vmem:[#allocation3] sm:$0xff] %vm493_vm1, %v580_v31 }
 0x209   : > { %v582_v32 = vpop.permute.xlu1 %581 }
 0x20a   : > { %586 = vst.msk [vmem:[#allocation3 + $0x8] sm:$0xff] %vm493_vm1, %v582_v32 }
 0x20d   : > { %v844_v33 = vpop.permute.xlu1 %843  ;;  %v674_v35 = vld [vmem:[#allocation3] sm:$0xff] }
 0x211   : > { %v1989_v34 = vpop.permute.xlu1 %1988  ;;  %v675_v36 = vld [vmem:[#allocation3 + $0x8] sm:$0xff] }
 0x212   : > { %v1991_v37 = vunpack.i.h.bf16 %v1989_v34  ;;  %v1990_v38 = vunpack.i.l.bf16 %v1989_v34  ;;  %v1843_v39 = vpack.c.bf16 %v675_v36, %v674_v35  ;;  %v2676_v40 = vpack.i.bf16 %v675_v36, %v674_v35 }
 0x214   : > { %v1853_v41 = vpack.c.bf16 %v1991_v37, %v1990_v38  ;;  %1844 = vmatpush3.bf16.msra.mxu1 %v1843_v39 }
 0x215   : > { %1845 = vmatprep.subr.bf16.mxu1 %v2277_v0  ;;  %v1025_v42 = vpop.permute.xlu1 %1024 }
 0x216   : > { %1855 = vmatpush3.bf16.xpose.msk.msra.mxu0 %vm2658_vm3, %v1853_v41 }
 0x217   : > { %1863 = vmatprep.subr.bf16.mxu0 %v2277_v0 }
 0x21d   : > { %1790 = vmatmul.mubr.msk.f32.vlgmr.msra.gmra.mrb[4].mxu0 %vm676_vm2, %v1025_v42 }
 0x21e   : > { %1810 = vmatprep.mubr.msk.f32.mxu0 %vm2278_vm0, %v2279_v1 }
 0x277   : > { %v752_v43 = vpop.f32.mrb[2].mxu0 }
 0x278   : > { %v1763_v44 = vpop.f32.mrb[3].mxu0  ;;  %v757_v45 = vsel %vm756_vm4, %v752_v43, -inf }
 0x279   : > { %758 = vmax.xlane.f32.xlu0 %v757_v45 }
 0x2f0   : > { %v1102_v46 = vpop.f32.mrb[4].mxu0 }
 0x2f1   : > { %v1791_v47 = vpop.f32.mrb[5].mxu0  ;;  %v1106_v53 = vsel %vm756_vm4, %v1102_v46, -inf }
 0x306   : > { %v759_v48 = vpop.xlane.xlu0 %758 }
 0x307   : > { %v760_v49 = vsub.f32 %v752_v43, %v759_v48 }
 0x309   : > { %v761_v50 = vmul.f32 1.442695, %v760_v49 }
 0x30b   : > { %2012 = vpow2.f32 %v761_v50 }
 0x315   : > { %v2013_v51 = vpop.eup %2012 }
 0x316   : > { %v763_v52 = vsel %vm756_vm4, %v2013_v51, 0.0 }
 0x317   : > { %764 = vadd.xlane.f32.xlu0 %v763_v52 }
 0x32d   : > { %1983 = vrot.lane.b32.xlu0 %v2663_v30, %s2281_s25 }
 0x34c   : > { %1107 = vmax.xlane.f32.xlu0 %v1106_v53 }
 0x362   : > { %1993 = vrot.lane.b32.xlu0 %v2676_v40, %s2281_s25  ;;  %s474_s25 = scalar_lea.vmem [#allocation14], %s1659_s22  ;;  %s2287_s22 = smov [#allocation14]  }
 0x363   : > { %s2178_s23 = sshll.u32 %s2287_s22, 4  ;;  %s2179_s23 = int_to_ptr.vmem [resolvable:$false] %s2178_s23 }
 0x364   : > { %s2180_s20 = scalar_lea.vmem %s2179_s23, 256 }
 0x366   : > { %1203 = vrot.lane.b32.xlu0 %v669_v25, %s2283_s30 }
 0x3a4   : > { %v765_v54 = vpop.xlane.xlu0 %764 }
 0x3a5   : > { %2014 = vrcp.f32 %v765_v54 }
 0x3a8   : > { %v1984_v55 = vpop.permute.xlu0 %1983 }
 0x3a9   : > { %v1986_v56 = vunpack.i.h.bf16 %v1984_v55  ;;  %v1985_v57 = vunpack.i.l.bf16 %v1984_v55 }
 0x3ab   : > { %v1846_v60 = vpack.c.bf16 %v1986_v56, %v1985_v57  ;;  %v1383_v56 = vld [vmem:[#allocation13] sm:$0xff]  ;;  %v1384_v57 = vld [vmem:[#allocation13 + $0x8] sm:$0xff] }
 0x3af   : > { %v2015_v58 = vpop.eup %2014 }
 0x3b0   : > { %v768_v59 = vmul.f32 %v2015_v58, %v2013_v51  ;;  %v1867_v58 = vpack.c.bf16 %v1384_v57, %v1383_v56 }
 0x3b2   : > { %1769 = vmatmul.mubr.msk.f32.vlgmr.msra.gmra.mrb[2].mxu1 %vm756_vm4, %v768_v59  ;;  %v1386_v59 = vld [vmem:[#allocation13 + $0x18] sm:$0xff] }
 0x3b3   : > { %1848 = vmatpush3.bf16.xpose.msk.msra.mxu1 %vm2658_vm3, %v1846_v60  ;;  %1775 = vmatprep.mubr.msk.f32.mxu1 %vm2278_vm0, %v2279_v1 }
 0x3b4   : > { %1849 = vmatprep.subr.bf16.mxu1 %v2277_v0 }
 0x3ba   : > { %1776 = vmatmul.mubr.msk.f32.vlgmr.msra.gmra.mrb[4].mxu1 %vm676_vm2, %v844_v33 }
 0x3bb   : > { %1782 = vmatprep.mubr.msk.f32.mxu1 %vm2278_vm0, %v2279_v1 }
 0x3d9   : > { %v1108_v61 = vpop.xlane.xlu0 %1107 }
 0x3da   : > { %v1109_v62 = vsub.f32 %v1102_v46, %v1108_v61 }
 0x3dc   : > { %v1110_v5 = vmul.f32 1.442695, %v1109_v62 }
 0x3dd   : > { %v1994_v63 = vpop.permute.xlu0 %1993 }
 0x3de   : > { %v1996_v2 = vunpack.i.h.bf16 %v1994_v63  ;;  %v1995_v3 = vunpack.i.l.bf16 %v1994_v63  ;;  %2016 = vpow2.f32 %v1110_v5 }
 0x3e0   : > { %v1850_v4 = vpack.c.bf16 %v1996_v2, %v1995_v3 }
 0x3e1   : > { %v1204_v34 = vpop.permute.xlu0 %1203 }
 0x3e2   : > { %1851 = vmatpush3.bf16.msra.mxu1 %v1850_v4 }
 0x3e3   : > { %1856 = vmatprep.subr.bf16.mxu1 %v2277_v0 }
 0x3e8   : > { %v2017_v11 = vpop.eup %2016 }
 0x3e9   : > { %v1112_v12 = vsel %vm756_vm4, %v2017_v11, 0.0 }
 0x485   : > { %v838_v6 = vpop.f32.mrb[2].mxu1 }
 0x486   : > { %842 = vst.msk [vmem:[#allocation4] sm:$0xff] %vm676_vm2, %v838_v6  ;;  %v1770_v7 = vpop.f32.mrb[3].mxu1 }
 0x48d   : > { %v921_v8 = vpop.f32.mrb[4].mxu1 }
 0x48e   : > { %v1777_v9 = vpop.f32.mrb[5].mxu1  ;;  %v925_v10 = vsel %vm756_vm4, %v921_v8, -inf }
 0x48f   : > { %926 = vmax.xlane.f32.xlu1 %v925_v10 }
 0x493   : > { %1113 = vadd.xlane.f32.xlu1 %v1112_v12 }
 0x4a4   : > { %1998 = vrot.lane.b32.xlu1 %v2676_v40, %s2282_s16  ;;  %s1515_s16 = sshll.u32 %s474_s25, 4  ;;  %s2752_s16 = int_to_ptr.vmem [resolvable:$true] %s1515_s16 }
 0x4a5   : > { %s2174_s0 = scalar_lea.vmem %s2752_s16, 128  ;;  %p2181_p13 = scmp.lt.s32.totalorder %s2752_s16, %s2179_s23 }
 0x4a6   : > { %p2175_p4 = scmp.ne.s32.totalorder %s2752_s16, %s2174_s0  ;;  %p2182_p3 = scmp.lt.s32.totalorder %s2180_s20, %s2174_s0 }
 0x4a8   : > { %p2176_p8 = pnand %p2175_p4, %p2499_p10  ;;  %p2183_p5 = por %p2182_p3, %p2181_p13 }
 0x4aa   : > { %p2177_p1 = pneg %p2176_p8 }
 0x4ac   : > { %p2184_p11 = pnand %p2183_p5, %p2177_p1 }
 0x51c   : > { %v927_v13 = vpop.xlane.xlu1 %926 }
 0x51d   : > { %v928_v14 = vsub.f32 %v921_v8, %v927_v13 }
 0x51f   : > { %v929_v15 = vmul.f32 1.442695, %v928_v14 }
 0x520   : > { %v1114_v19 = vpop.xlane.xlu1 %1113 }
 0x521   : > { %2018 = vpow2.f32 %v929_v15 }
 0x524   : > { %v1999_v20 = vpop.permute.xlu1 %1998 }
 0x525   : > { %v2001_v22 = vunpack.i.h.bf16 %v1999_v20  ;;  %v2000_v23 = vunpack.i.l.bf16 %v1999_v20 }
 0x527   : > { %v1857_v27 = vpack.c.bf16 %v2001_v22, %v2000_v23 }
 0x52b   : > { %v2019_v17 = vpop.eup %2018 }
 0x52c   : > { %v931_v18 = vsel %vm756_vm4, %v2019_v17, 0.0 }
 0x52d   : > { %932 = vadd.xlane.f32.xlu1 %v931_v18 }
 0x53e   : > { %2003 = vrot.lane.b32.xlu1 %v2663_v30, %s2283_s30 }
 0x5ba   : > { %v933_v21 = vpop.xlane.xlu1 %932 }
 0x5bb   : > { %2020 = vrcp.f32 %v933_v21 }
 0x5bc   : > { %2022 = vrcp.f32 %v1114_v19  ;;  %v1689_v19 = vld [vmem:[%s2850_s27] ss:$0 sm:$0xff] }
 0x5be   : > { %v2004_v29 = vpop.permute.xlu1 %2003 }
 0x5bf   : > { %v2006_v30 = vunpack.i.h.bf16 %v2004_v29  ;;  %v2005_v32 = vunpack.i.l.bf16 %v2004_v29 }
 0x5c1   : > { %v1860_v33 = vpack.c.bf16 %v2006_v30, %v2005_v32 }
 0x5c5   : > { %v2021_v24 = vpop.eup %2020 }
 0x5c6   : > { %v936_v25 = vmul.f32 %v2021_v24, %v2019_v17  ;;  %v2023_v26 = vpop.eup %2022  ;;  %v1688_v17 = vld [vmem:[%s2849_s19] ss:$0 sm:$0xff] }
 0x5c7   : > { %v1117_v31 = vmul.f32 %v2023_v26, %v2017_v11 }
 0x5c8   : > { %1783 = vmatmul.mubr.msk.f32.vlgmr.msra.gmra.mrb[6].mxu1 %vm756_vm4, %v936_v25 }
 0x5c9   : > { %1858 = vmatpush3.bf16.msra.mxu1 %v1857_v27  ;;  %1796 = vmatprep.mubr.msk.f32.mxu1 %vm2278_vm0, %v2279_v1 }
 0x5ca   : > { %1859 = vmatprep.subr.bf16.mxu1 %v2277_v0 }
 0x5cc   : > { %1797 = vmatmul.mubr.msk.f32.vlgmr.msra.gmra.mrb[8].mxu1 %vm756_vm4, %v1117_v31 }
 0x5cd   : > { %1803 = vmatprep.mubr.msk.f32.mxu1 %vm2278_vm0, %v2279_v1 }
 0x5d2   : > { %1862 = vmatpush3.bf16.xpose.msk.msra.mxu1 %vm2658_vm3, %v1860_v33 }
 0x5d9   : > { %1804 = vmatmul.mubr.msk.f32.vlgmr.msra.gmra.mrb[10].mxu1 %vm676_vm2, %v1204_v34 }
 0x69b   : > { %v1014_v35 = vpop.f32.mrb[6].mxu1 }
 0x69c   : > { %v1784_v36 = vpop.f32.mrb[7].mxu1 }
 0x69f   : > { %v1193_v37 = vpop.f32.mrb[8].mxu1 }
 0x6a0   : > { %v1798_v38 = vpop.f32.mrb[9].mxu1 }
 0x6ac   : > { %v1281_v39 = vpop.f32.mrb[10].mxu1 }
 0x6ad   : > { %v1805_v41 = vpop.f32.mrb[11].mxu1  ;;  %v1285_v42 = vsel %vm756_vm4, %v1281_v39, -inf }
 0x6ae   : > { %1286 = vmax.xlane.f32.xlu1 %v1285_v42 }
 0x6bf   : > { %1019 = vrot.lane.b32.xlu1 %v1014_v35, %s2284_s2 }
 0x6c3   : > { %1198 = vrot.lane.b32.xlu1 %v1193_v37, %s2285_s29  ;;  %s2851_s29 = sld [smem:[#allocation27_spill]] }
 0x73b   : > { %v1287_v43 = vpop.xlane.xlu1 %1286 }
 0x73c   : > { %v1288_v44 = vsub.f32 %v1281_v39, %v1287_v43 }
 0x73e   : > { %v1289_v28 = vmul.f32 1.442695, %v1288_v44 }
 0x73f   : > { %v1020_v45 = vpop.permute.xlu1 %1019 }
 0x740   : > { %2024 = vpow2.f32 %v1289_v28  ;;  %1023 = vst.msk [vmem:[#allocation4] sm:$0xff] %vm1022_vm5, %v1020_v45 }
 0x743   : > { %v1199_v46 = vpop.permute.xlu1 %1198 }
 0x744   : > { %1202 = vst.msk [vmem:[#allocation4] sm:$0xff] %vm1201_vm6, %v1199_v46 }
 0x74a   : > { %v2025_v47 = vpop.eup %2024 }
 0x74b   : > { %v1291_v48 = vsel %vm756_vm4, %v2025_v47, 0.0 }
 0x74c   : > { %1292 = vadd.xlane.f32.xlu0 %v1291_v48 }
 0x762   : > { %2008 = vrot.lane.b32.xlu0 %v2676_v40, %s2283_s30  ;;  %v1385_v40 = vld [vmem:[#allocation13 + $0x10] sm:$0xff] }
 0x763   : > { %v1870_v60 = vpack.c.bf16 %v1386_v59, %v1385_v40 }
 0x7d9   : > { %v1293_v49 = vpop.xlane.xlu0 %1292 }
 0x7da   : > { %2026 = vrcp.f32 %v1293_v49 }
 0x7dd   : > { %v2009_v50 = vpop.permute.xlu0 %2008 }
 0x7de   : > { %v2011_v51 = vunpack.i.h.bf16 %v2009_v50  ;;  %v2010_v52 = vunpack.i.l.bf16 %v2009_v50 }
 0x7e0   : > { %v1864_v53 = vpack.c.bf16 %v2011_v51, %v2010_v52 }
 0x7e2   : > { %1865 = vmatpush3.bf16.msra.mxu0 %v1864_v53 }
 0x7e3   : > { %1866 = vmatprep.subr.bf16.mxu0 %v2277_v0 }
 0x7e4   : > { %v2027_v54 = vpop.eup %2026 }
 0x7e5   : > { %v1296_v55 = vmul.f32 %v2027_v54, %v2025_v47 }
 0x7e7   : > { %1811 = vmatmul.mubr.msk.f32.vlgmr.msra.gmra.mrb[6].mxu0 %vm756_vm4, %v1296_v55 }
 0x7e8   : > { %1821 = vmatprep.mubr.msk.f32.mxu0 %vm2278_vm0, %v2279_v1  ;;  %1868 = vmatpush3.bf16.msra.mxu0 %v1867_v58  ;;  %v1686_v1 = vld [vmem:[%s2807_s7] ss:$0 sm:$0xff] }
 0x7e9   : > { %1869 = vmatprep.subr.bf16.mxu0 %v2277_v0 }
 0x7ec   : > { %1871 = vmatpush3.bf16.msra.mxu0 %v1870_v60 }
 0x8ba   : > { %v1372_v61 = vpop.f32.mrb[6].mxu0 }
 0x8bb   : > { %1377 = vrot.lane.b32.xlu0 %v1372_v61, %s2286_s28  ;;  %v1812_v62 = vpop.f32.mrb[7].mxu0  ;;  %s2750_s28 = scalar_lea.hbm %s2851_s29, %s1691_s12 }
 0x92d   : > { %v1378_v63 = vpop.permute.xlu0 %1377 }
 0x92e   : > { %1381 = vst.msk [vmem:[#allocation4] sm:$0xff] %vm1380_vm7, %v1378_v63 }
 0x935   : > { %v1382_v2 = vld [vmem:[#allocation4] sm:$0xff] }
 0x936   : > { %1822 = vmatmul.mubr.msk.f32.vlgmr.msra.gmra.mrb[8].mxu0 %vm493_vm1, %v1382_v2 }
 0xa09   : > { %v1463_v3 = vpop.f32.mrb[8].mxu0 }
 0xa0a   : > { %v1464_v4 = vadd.f32 %v1686_v1, %v1463_v3  ;;  %v1823_v5 = vpop.f32.mrb[9].mxu0 }
 0xa0c   : > { %v1467_v0 = vadd.f32 %v1464_v4, %v2637_v16 }
 0xa0e   : > { %v1470_v6 = vsel %vm493_vm1, %v1467_v0, 0.0 }
 0xa0f   : > { %1471 = vadd.xlane.f32.xlu1 %v1470_v6 }
 0xa9c   : > { %v1472_v7 = vpop.xlane.xlu1 %1471 }
 0xa9d   : > { %v1474_v8 = vmul.f32 0.03125, %v1472_v7 }
 0xa9f   : > { %v1475_v9 = vsub.f32 %v1467_v0, %v1474_v8 }
 0xaa1   : > { %v1476_v10 = vmul.f32 %v1475_v9, %v1475_v9 }
 0xaa3   : > { %v1477_v11 = vsel %vm493_vm1, %v1476_v10, 0.0 }
 0xaa4   : > { %1478 = vadd.xlane.f32.xlu0 %v1477_v11 }
 0xb31   : > { %v1479_v12 = vpop.xlane.xlu0 %1478 }
 0xb32   : > { %v1480_v13 = vmul.f32 0.03125, %v1479_v12 }
 0xb34   : > { %v1481_v14 = vadd.f32 1e-12, %v1480_v13 }
 0xb36   : > { %2028 = vrsqrt.f32 %v1481_v14 }
 0xb40   : > { %v2029_v15 = vpop.eup %2028 }
 0xb41   : > { %v1483_v18 = vmul.f32 %v2029_v15, %v1475_v9 }
 0xb43   : > { %v1490_v20 = vmul.f32 %v1688_v17, %v1483_v18 }
 0xb45   : > { %v1497_v21 = vadd.f32 %v1689_v19, %v1490_v20 }
 0xb47   : > { %v1498_v22 = vadd.f32 %v1497_v21, %v2637_v16 }
 0xb49   : > { %1499 = vst.msk [vmem:[%s474_s25] sm:$0xff] %vm493_vm1, %v1498_v22 }
 0xb4a   : > { %2187 = shalt.err (!%p2184_p11)
}
 0xb4b   : > { %s2188_s10 = scalar_lea.hbm %s2750_s28, 128  ;;  %s2192_s21 = scalar_lea.hbm %s2851_s29, 256 }
 0xb4c   : > { %p2189_p12 = scmp.ne.s32.totalorder %s2750_s28, %s2188_s10  ;;  %p2193_p9 = scmp.lt.u32.totalorder %s2750_s28, %s2851_s29 }
 0xb4d   : > { %p2194_p0 = scmp.lt.u32.totalorder %s2192_s21, %s2188_s10  ;;  %p2196_p4 = scmp.lt.u32.totalorder %s2188_s10, %s2750_s28 }
 0xb4e   : > { %p2190_p6 = pnand %p2189_p12, %p2499_p10 }
 0xb4f   : > { %p2195_p2 = por %p2194_p0, %p2193_p9 }
 0xb50   : > { %p2191_p7 = pneg %p2190_p6 }
 0xb51   : > { %p2197_p8 = por %p2196_p4, %p2195_p2 }
 0xb53   : > { %p2198_p1 = pnand %p2197_p8, %p2191_p7 }
 0xb55   : > { %2201 = shalt.err (!%p2198_p1)
}
 0xb56   : > { %1888 = dma.vmem_to_hbm [thread:$0]  (%p2499_p10), %s2752_s16, 128, %s2750_s28, %s1501_s8  }
 0xb57 PF: > { %s2852_s12 = sld [smem:[#allocation20_spill]]  ;;  %s2853_s25 = sld [smem:[#allocation22_spill]] }
 0xb58   : > { %p2855_p3 = scmp.ge.s32.totalorder %s2268_s18, 2 }
 0xb5d   : > { %s1527_s30 = sand.u32 1, %s2852_s12   ;;  %p2854_p13 = scmp.ne.s32.totalorder %s2853_s25, 0 }
 0xb5e   : > { %s1528_s2 = scalar_lea.sflag [#allocation7], %s1527_s30 }
 0xb5f   : > { %p1908_p5 = pnand %p2855_p3, %p2854_p13 }
 0xb61   : > { %2243 = dma.done.wait (!%p1908_p5), %s1528_s2, 128  }
 0xb62   : > { %2245 = vsyncadd (!%p1908_p5), %s1528_s2, 4294967168  ;;  %s30_s18 = sadd.s32 1, %s2268_s18   ;;  %s2856_s13 = smov %s2252_s14 }
 0xb63   : > { %p27_p11 = scmp.ge.s32.totalorder %s30_s18, 4   ;;  %s2857_s14 = smov %s2256_s15 }
 0xb64   : > { %s2858_s15 = smov %s2514_s24  ;;  %s2859_s16 = smov %s2264_s17 }
 0xb65   : > { %s2860_s17 = smov %s2862_s26  ;;  %29 = sbr.rel (!%p27_p11) target bundleno = 15 (0xf), region = 134 }
 0xb6c   :  { %1533 = vsyncpa [#allocation6], 1 }
 0xb6d   :  { %1535 = vsyncpa [#allocation6 + $0x1], 1 }
 0xb6e   :  { %1536 = vsyncpa [#allocation9], 1 }
 0xb6f   :  { %1538 = vsyncpa [#allocation9 + $0x1], 1 }
 0xb70   :  { %1539 = vsyncpa [#allocation12], 1 }
 0xb71   :  { %1540 = vsyncpa [#allocation7], 1 }
 0xb72   :  { %1542 = vsyncpa [#allocation7 + $0x1], 1 }

</bundles_post_ra>
